<compile_context>
chip_gen: v5e
topology: v5e:2x2
jax: 0.10.0
libtpu: 0.0.40
codegen_flags: <defaults>
</compile_context>

<pallas_src>
import functools

import jax
import jax.numpy as jnp
from jax.experimental import pallas as pl
from jax.experimental.pallas import tpu as pltpu


def cbam_kernel(x_ref, w1t_ref, w2t_ref, wconv_ref, o_ref, *, l_true):
    # x_ref:     (Bt, C, Lp) VMEM block  (Bt batch elements, L padded to Lp)
    # w1t_ref:   (C, H)      VMEM        fc1 weight, transposed (no bias)
    # w2t_ref:   (H, C)      VMEM        fc2 weight, transposed (no bias)
    # wconv_ref: (2, K)      SMEM        spatial conv taps (in_ch=2, out_ch=1)
    # o_ref:     (Bt, C, Lp) VMEM block
    x = x_ref[...]                                    # (Bt, C, Lp), input dtype
    Bt, C, Lp = x.shape
    K = wconv_ref.shape[1]
    pad = K // 2                                      # odd K (Conv1d padding=K//2)

    # ---------------- Channel attention (lane-dense: C on the 128-lane axis) ----
    # f32 accumulation directly from x; no full-slab f32 copy is kept alive.
    avg_c = jnp.sum(x, axis=2, dtype=jnp.float32) * (1.0 / l_true)     # (Bt, C)
    if Lp != l_true:
        # Padded lanes hold zeros (fine for the sum); mask them for the max.
        lane3 = jax.lax.broadcasted_iota(jnp.int32, (Bt, C, Lp), 2)
        x_for_max = jnp.where(lane3 < l_true, x, jnp.asarray(-jnp.inf, x.dtype))
    else:
        x_for_max = x
    max_c = jnp.max(x_for_max, axis=2).astype(jnp.float32)             # (Bt, C)
    pooled = jnp.concatenate([avg_c, max_c], axis=0)                   # (2*Bt, C)

    # shared MLP: Linear(C->H, no bias), ReLU, Linear(H->C, no bias)
    h = jnp.maximum(
        jnp.dot(pooled, w1t_ref[...].astype(jnp.float32),
                preferred_element_type=jnp.float32), 0.0)              # (2*Bt, H)
    logits = jnp.dot(h, w2t_ref[...].astype(jnp.float32),
                     preferred_element_type=jnp.float32)               # (2*Bt, C)
    ca = jax.nn.sigmoid(logits[:Bt] + logits[Bt:])                     # (Bt, C) f32
    x1 = x * ca[:, :, None].astype(x.dtype)                            # (Bt, C, Lp)

    # ---------------- Spatial attention ----------------
    avg_s = jnp.sum(x1, axis=1, dtype=jnp.float32) * (1.0 / C)         # (Bt, Lp)
    max_s = jnp.max(x1, axis=1).astype(jnp.float32)                    # (Bt, Lp)
    stacked = jnp.concatenate([avg_s, max_s], axis=0)                  # (2*Bt, Lp)

    # K-tap cross-correlation with zero padding: one XLU roll + one edge mask
    # per tap on the stacked (avg, max) array (halves roll/mask traffic).
    lane = jax.lax.broadcasted_iota(jnp.int32, (Bt, Lp), 1)
    conv = jnp.zeros((Bt, Lp), jnp.float32)
    for k in range(K):                                 # static, small (K=7)
        d = k - pad                                    # static tap offset
        if d == 0:
            r = stacked
        else:
            r = pltpu.roll(stacked, shift=(-d) % Lp, axis=1)
        tap = wconv_ref[0, k] * r[:Bt] + wconv_ref[1, k] * r[Bt:]      # (Bt, Lp)
        if d != 0:
            valid = jnp.logical_and(lane + d >= 0, lane + d < Lp)
            tap = jnp.where(valid, tap, 0.0)
        conv = conv + tap
    sa = jax.nn.sigmoid(conv)                                          # (Bt, Lp)

    o_ref[...] = (x1 * sa[:, None, :].astype(x.dtype)).astype(o_ref.dtype)


def cbam_pallas(x, w1, w2, wconv):
    """x: (B, C, L); w1: (H, C); w2: (C, H); wconv: (1, 2, K) (PyTorch layouts)."""
    B, C, L = x.shape
    H = w1.shape[0]
    K = wconv.shape[-1]
    assert K % 2 == 1, "Conv1d(padding=K//2) only matches PyTorch output for odd K"

    w1t = jnp.asarray(w1).T                            # (C, H)
    w2t = jnp.asarray(w2).T                            # (H, C)
    wconv2 = jnp.asarray(wconv).reshape(2, K).astype(jnp.float32)

    itemsize = jnp.dtype(x.dtype).itemsize

    # Per-generation scoped-VMEM budget: ~3/4 of physical VMEM, capped at 96 MiB
    # (-> ~48 MiB on v7x's 64 MiB/TC, ~96 MiB on v5e/v6e's 128 MiB).
    try:
        vmem_cap = int(getattr(pltpu.get_tpu_info(), "vmem_capacity_bytes",
                               128 << 20))
    except Exception:
        vmem_cap = 128 << 20
    vmem_limit = int(max(32 << 20, min(vmem_cap * 3 // 4, 96 << 20)))

    # Pad L up to a 128-lane multiple so stores are unmasked vst (not vst.msk).
    Lp = ((L + 127) // 128) * 128

    # Working-set model per batch element: double-buffered in+out blocks in the
    # input dtype plus ~2 f32-slab slack for in-kernel temps.  Target ~60% of
    # the scoped limit.
    per_b_bytes = C * Lp * itemsize
    per_b_ws = 4 * per_b_bytes + 2 * C * Lp * 4
    bt_vmem = max(1, int(0.6 * vmem_limit) // per_b_ws)
    Bt = max(1, min(B, bt_vmem))
    # Guarantee >=2 grid steps (ideally >=4) so v7x's two TensorCores both get
    # work and the DMA pipeline has something to overlap.
    if B >= 4:
        Bt = min(Bt, -(-B // 4))
    elif B >= 2:
        Bt = min(Bt, -(-B // 2))

    n_blocks = -(-B // Bt)                             # no "Bt divides B" constraint
    Bp = n_blocks * Bt

    xp = x
    if Lp != L or Bp != B:
        xp = jnp.pad(x, ((0, Bp - B), (0, 0), (0, Lp - L)))

    kernel = functools.partial(cbam_kernel, l_true=L)

    # TODO(synk): add an L-tiled two-phase path (per-channel sum/max accumulation
    # over L tiles -> ca; then stream L tiles, apply ca, halo K-tap conv) for
    # very large C*L that exceeds v7x's 64 MiB VMEM even at Bt=1.
    out = pl.pallas_call(
        kernel,
        out_shape=jax.ShapeDtypeStruct((Bp, C, Lp), x.dtype),
        grid=(n_blocks,),
        in_specs=[
            pl.BlockSpec((Bt, C, Lp), lambda b: (b, 0, 0)),
            pl.BlockSpec((C, H), lambda b: (0, 0)),
            pl.BlockSpec((H, C), lambda b: (0, 0)),
            pl.BlockSpec(memory_space=pltpu.MemorySpace.SMEM),  # small conv taps
        ],
        out_specs=pl.BlockSpec((Bt, C, Lp), lambda b: (b, 0, 0)),
        compiler_params=pltpu.CompilerParams(
            dimension_semantics=("parallel",),
            vmem_limit_bytes=vmem_limit),
    )(xp, w1t, w2t, wconv2)

    if Lp != L or Bp != B:
        out = out[:B, :, :L]
    return out


def cbam_ref(x, w1, w2, wconv):
    """Pure-JAX reference mirroring the PyTorch forward."""
    avg = x.mean(axis=-1)                 # (B, C)
    mx = x.max(axis=-1)                   # (B, C)

    def fc(v):
        return jnp.maximum(v @ w1.T, 0.0) @ w2.T

    ca = jax.nn.sigmoid(fc(avg) + fc(mx))[:, :, None]     # (B, C, 1)
    x1 = x * ca
    asp = x1.mean(axis=1, keepdims=True)
    msp = x1.max(axis=1, keepdims=True)
    sp = jnp.concatenate([asp, msp], axis=1)              # (B, 2, L)
    K = wconv.shape[-1]
    out = jax.lax.conv_general_dilated(
        sp, wconv, window_strides=(1,), padding=[(K // 2, K // 2)],
        dimension_numbers=("NCH", "OIH", "NCH"))
    return x1 * jax.nn.sigmoid(out)


if __name__ == "__main__":
    B, C, L = 2, 32, 128
    reduction, K = 16, 7
    H = C // reduction

    key = jax.random.PRNGKey(0)
    kx, k1, k2, kc = jax.random.split(key, 4)
    x = jax.random.normal(kx, (B, C, L), jnp.float32)
    # deterministic synthetic weights (PyTorch-native shapes, bias=False everywhere)
    w1 = jax.random.normal(k1, (H, C), jnp.float32) * (1.0 / jnp.sqrt(C))
    w2 = jax.random.normal(k2, (C, H), jnp.float32) * (1.0 / jnp.sqrt(H))
    wconv = jax.random.normal(kc, (1, 2, K), jnp.float32) * (1.0 / jnp.sqrt(2 * K))

    out = jax.block_until_ready(cbam_pallas(x, w1, w2, wconv))
    ref = cbam_ref(x, w1, w2, wconv)

    assert out.shape == (B, C, L)
    assert jnp.allclose(out, ref, atol=1e-5, rtol=1e-5), \
        float(jnp.max(jnp.abs(out - ref)))
    print("KERNEL_OK")
</pallas_src>

<mosaic_0001>
module attributes {stable_mosaic.version = 11 : i64} {
  func.func @cbam_kernel(%arg0: i32, %arg1: memref<1x32x128xf32, #tpu.memory_space<vmem>>, %arg2: memref<32x2xf32, #tpu.memory_space<vmem>>, %arg3: memref<2x32xf32, #tpu.memory_space<vmem>>, %arg4: memref<2x7xf32, #tpu.memory_space<smem>>, %arg5: memref<1x32x128xf32, #tpu.memory_space<vmem>>) attributes {dimension_semantics = [#tpu.dimension_semantics<parallel>], iteration_bounds = array<i64: 2>, scalar_prefetch = 0 : i64, scratch_operands = 0 : i64, tpu.core_type = #tpu.core_type<tc>, window_params = [{transform_indices = @transform_0, window_bounds = array<i64: 1, 32, 128>}, {pipeline_mode = #tpu.pipeline_mode<synchronous>, transform_indices = @transform_1, window_bounds = array<i64: 32, 2>}, {pipeline_mode = #tpu.pipeline_mode<synchronous>, transform_indices = @transform_2, window_bounds = array<i64: 2, 32>}, {transform_indices = @transform_3, window_bounds = array<i64: 2, 7>}, {transform_indices = @transform_4, window_bounds = array<i64: 1, 32, 128>}]} {
    %c0 = arith.constant 0 : index
    %c0_0 = arith.constant 0 : index
    %c0_1 = arith.constant 0 : index
    %0 = vector.load %arg1[%c0, %c0_0, %c0_1] : memref<1x32x128xf32, #tpu.memory_space<vmem>>, vector<1x32x128xf32>
    %cst = arith.constant dense<0.000000e+00> : vector<1x32xf32>
    %1 = vector.multi_reduction <add>, %0, %cst [2] : vector<1x32x128xf32> to vector<1x32xf32>
    %cst_2 = arith.constant 7.812500e-03 : f32
    %2 = vector.broadcast %cst_2 : f32 to vector<1x32xf32>
    %3 = arith.mulf %1, %2 : vector<1x32xf32>
    %cst_3 = arith.constant dense<0xFF800000> : vector<1x32xf32>
    %4 = vector.multi_reduction <maximumf>, %0, %cst_3 [2] : vector<1x32x128xf32> to vector<1x32xf32>
    %5 = tpu.concatenate %3, %4 in 0 : vector<1x32xf32>, vector<1x32xf32> -> vector<2x32xf32>
    %c0_4 = arith.constant 0 : index
    %c0_5 = arith.constant 0 : index
    %6 = vector.load %arg2[%c0_4, %c0_5] : memref<32x2xf32, #tpu.memory_space<vmem>>, vector<32x2xf32>
    %cst_6 = arith.constant dense<0.000000e+00> : vector<2x2xf32>
    %7 = tpu.matmul %5, %6, %cst_6 {dimension_numbers = #tpu.dot_dimension_numbers<[1], [0], [0], [1], [0, 0, 1, 1], [], []>} : vector<2x32xf32>, vector<32x2xf32>, vector<2x2xf32> -> vector<2x2xf32>
    %cst_7 = arith.constant 0.000000e+00 : f32
    %8 = vector.broadcast %cst_7 : f32 to vector<2x2xf32>
    %9 = arith.maximumf %7, %8 : vector<2x2xf32>
    %c0_8 = arith.constant 0 : index
    %c0_9 = arith.constant 0 : index
    %10 = vector.load %arg3[%c0_8, %c0_9] : memref<2x32xf32, #tpu.memory_space<vmem>>, vector<2x32xf32>
    %cst_10 = arith.constant dense<0.000000e+00> : vector<2x32xf32>
    %11 = tpu.matmul %9, %10, %cst_10 {dimension_numbers = #tpu.dot_dimension_numbers<[1], [0], [0], [1], [0, 0, 1, 1], [], []>} : vector<2x2xf32>, vector<2x32xf32>, vector<2x32xf32> -> vector<2x32xf32>
    %12 = vector.extract_strided_slice %11 {offsets = [0, 0], sizes = [1, 32], strides = [1, 1]} : vector<2x32xf32> to vector<1x32xf32>
    %13 = vector.extract_strided_slice %11 {offsets = [1, 0], sizes = [1, 32], strides = [1, 1]} : vector<2x32xf32> to vector<1x32xf32>
    %14 = arith.addf %12, %13 : vector<1x32xf32>
    %15 = arith.negf %14 : vector<1x32xf32>
    %16 = math.exp %15 : vector<1x32xf32>
    %cst_11 = arith.constant 1.000000e+00 : f32
    %17 = vector.broadcast %cst_11 : f32 to vector<1x32xf32>
    %18 = arith.addf %17, %16 : vector<1x32xf32>
    %19 = arith.divf %17, %18 : vector<1x32xf32>
    %20 = vector.shape_cast %19 : vector<1x32xf32> to vector<1x32x1xf32>
    %21 = vector.broadcast %20 : vector<1x32x1xf32> to vector<1x32x128xf32>
    %22 = arith.mulf %0, %21 : vector<1x32x128xf32>
    %cst_12 = arith.constant dense<0.000000e+00> : vector<1x128xf32>
    %23 = vector.multi_reduction <add>, %22, %cst_12 [1] : vector<1x32x128xf32> to vector<1x128xf32>
    %cst_13 = arith.constant 3.125000e-02 : f32
    %24 = vector.broadcast %cst_13 : f32 to vector<1x128xf32>
    %25 = arith.mulf %23, %24 : vector<1x128xf32>
    %cst_14 = arith.constant dense<0xFF800000> : vector<1x128xf32>
    %26 = vector.multi_reduction <maximumf>, %22, %cst_14 [1] : vector<1x32x128xf32> to vector<1x128xf32>
    %27 = tpu.concatenate %25, %26 in 0 : vector<1x128xf32>, vector<1x128xf32> -> vector<2x128xf32>
    %28 = tpu.iota {dimensions = array<i32: 1>} : vector<1x128xi32>
    %cst_15 = arith.constant 0.000000e+00 : f32
    %29 = vector.broadcast %cst_15 : f32 to vector<1x128xf32>
    %c3_i32 = arith.constant 3 : i32
    %30 = tpu.dynamic_rotate %27 by %c3_i32 dim 1 : vector<2x128xf32>, i32 -> vector<2x128xf32>
    %c0_16 = arith.constant 0 : index
    %c0_17 = arith.constant 0 : index
    %31 = memref.load %arg4[%c0_16, %c0_17] : memref<2x7xf32, #tpu.memory_space<smem>>
    %32 = vector.extract_strided_slice %30 {offsets = [0, 0], sizes = [1, 128], strides = [1, 1]} : vector<2x128xf32> to vector<1x128xf32>
    %33 = vector.broadcast %31 : f32 to vector<1x128xf32>
    %34 = arith.mulf %33, %32 : vector<1x128xf32>
    %c1 = arith.constant 1 : index
    %c0_18 = arith.constant 0 : index
    %35 = memref.load %arg4[%c1, %c0_18] : memref<2x7xf32, #tpu.memory_space<smem>>
    %36 = vector.extract_strided_slice %30 {offsets = [1, 0], sizes = [1, 128], strides = [1, 1]} : vector<2x128xf32> to vector<1x128xf32>
    %37 = vector.broadcast %35 : f32 to vector<1x128xf32>
    %38 = arith.mulf %37, %36 : vector<1x128xf32>
    %39 = arith.addf %34, %38 : vector<1x128xf32>
    %c-3_i32 = arith.constant -3 : i32
    %40 = vector.broadcast %c-3_i32 : i32 to vector<1x128xi32>
    %41 = arith.addi %28, %40 : vector<1x128xi32>
    %c0_i32 = arith.constant 0 : i32
    %42 = vector.broadcast %c0_i32 : i32 to vector<1x128xi32>
    %43 = arith.cmpi sge, %41, %42 : vector<1x128xi32>
    %c-3_i32_19 = arith.constant -3 : i32
    %44 = vector.broadcast %c-3_i32_19 : i32 to vector<1x128xi32>
    %45 = arith.addi %28, %44 : vector<1x128xi32>
    %c128_i32 = arith.constant 128 : i32
    %46 = vector.broadcast %c128_i32 : i32 to vector<1x128xi32>
    %47 = arith.cmpi slt, %45, %46 : vector<1x128xi32>
    %48 = arith.andi %43, %47 : vector<1x128xi1>
    %cst_20 = arith.constant 0.000000e+00 : f32
    %49 = vector.broadcast %cst_20 : f32 to vector<1x128xf32>
    %50 = arith.select %48, %39, %49 : vector<1x128xi1>, vector<1x128xf32>
    %51 = arith.addf %29, %50 : vector<1x128xf32>
    %c2_i32 = arith.constant 2 : i32
    %52 = tpu.dynamic_rotate %27 by %c2_i32 dim 1 : vector<2x128xf32>, i32 -> vector<2x128xf32>
    %c0_21 = arith.constant 0 : index
    %c1_22 = arith.constant 1 : index
    %53 = memref.load %arg4[%c0_21, %c1_22] : memref<2x7xf32, #tpu.memory_space<smem>>
    %54 = vector.extract_strided_slice %52 {offsets = [0, 0], sizes = [1, 128], strides = [1, 1]} : vector<2x128xf32> to vector<1x128xf32>
    %55 = vector.broadcast %53 : f32 to vector<1x128xf32>
    %56 = arith.mulf %55, %54 : vector<1x128xf32>
    %c1_23 = arith.constant 1 : index
    %c1_24 = arith.constant 1 : index
    %57 = memref.load %arg4[%c1_23, %c1_24] : memref<2x7xf32, #tpu.memory_space<smem>>
    %58 = vector.extract_strided_slice %52 {offsets = [1, 0], sizes = [1, 128], strides = [1, 1]} : vector<2x128xf32> to vector<1x128xf32>
    %59 = vector.broadcast %57 : f32 to vector<1x128xf32>
    %60 = arith.mulf %59, %58 : vector<1x128xf32>
    %61 = arith.addf %56, %60 : vector<1x128xf32>
    %c-2_i32 = arith.constant -2 : i32
    %62 = vector.broadcast %c-2_i32 : i32 to vector<1x128xi32>
    %63 = arith.addi %28, %62 : vector<1x128xi32>
    %c0_i32_25 = arith.constant 0 : i32
    %64 = vector.broadcast %c0_i32_25 : i32 to vector<1x128xi32>
    %65 = arith.cmpi sge, %63, %64 : vector<1x128xi32>
    %c-2_i32_26 = arith.constant -2 : i32
    %66 = vector.broadcast %c-2_i32_26 : i32 to vector<1x128xi32>
    %67 = arith.addi %28, %66 : vector<1x128xi32>
    %c128_i32_27 = arith.constant 128 : i32
    %68 = vector.broadcast %c128_i32_27 : i32 to vector<1x128xi32>
    %69 = arith.cmpi slt, %67, %68 : vector<1x128xi32>
    %70 = arith.andi %65, %69 : vector<1x128xi1>
    %cst_28 = arith.constant 0.000000e+00 : f32
    %71 = vector.broadcast %cst_28 : f32 to vector<1x128xf32>
    %72 = arith.select %70, %61, %71 : vector<1x128xi1>, vector<1x128xf32>
    %73 = arith.addf %51, %72 : vector<1x128xf32>
    %c1_i32 = arith.constant 1 : i32
    %74 = tpu.dynamic_rotate %27 by %c1_i32 dim 1 : vector<2x128xf32>, i32 -> vector<2x128xf32>
    %c0_29 = arith.constant 0 : index
    %c2 = arith.constant 2 : index
    %75 = memref.load %arg4[%c0_29, %c2] : memref<2x7xf32, #tpu.memory_space<smem>>
    %76 = vector.extract_strided_slice %74 {offsets = [0, 0], sizes = [1, 128], strides = [1, 1]} : vector<2x128xf32> to vector<1x128xf32>
    %77 = vector.broadcast %75 : f32 to vector<1x128xf32>
    %78 = arith.mulf %77, %76 : vector<1x128xf32>
    %c1_30 = arith.constant 1 : index
    %c2_31 = arith.constant 2 : index
    %79 = memref.load %arg4[%c1_30, %c2_31] : memref<2x7xf32, #tpu.memory_space<smem>>
    %80 = vector.extract_strided_slice %74 {offsets = [1, 0], sizes = [1, 128], strides = [1, 1]} : vector<2x128xf32> to vector<1x128xf32>
    %81 = vector.broadcast %79 : f32 to vector<1x128xf32>
    %82 = arith.mulf %81, %80 : vector<1x128xf32>
    %83 = arith.addf %78, %82 : vector<1x128xf32>
    %c-1_i32 = arith.constant -1 : i32
    %84 = vector.broadcast %c-1_i32 : i32 to vector<1x128xi32>
    %85 = arith.addi %28, %84 : vector<1x128xi32>
    %c0_i32_32 = arith.constant 0 : i32
    %86 = vector.broadcast %c0_i32_32 : i32 to vector<1x128xi32>
    %87 = arith.cmpi sge, %85, %86 : vector<1x128xi32>
    %c-1_i32_33 = arith.constant -1 : i32
    %88 = vector.broadcast %c-1_i32_33 : i32 to vector<1x128xi32>
    %89 = arith.addi %28, %88 : vector<1x128xi32>
    %c128_i32_34 = arith.constant 128 : i32
    %90 = vector.broadcast %c128_i32_34 : i32 to vector<1x128xi32>
    %91 = arith.cmpi slt, %89, %90 : vector<1x128xi32>
    %92 = arith.andi %87, %91 : vector<1x128xi1>
    %cst_35 = arith.constant 0.000000e+00 : f32
    %93 = vector.broadcast %cst_35 : f32 to vector<1x128xf32>
    %94 = arith.select %92, %83, %93 : vector<1x128xi1>, vector<1x128xf32>
    %95 = arith.addf %73, %94 : vector<1x128xf32>
    %c0_36 = arith.constant 0 : index
    %c3 = arith.constant 3 : index
    %96 = memref.load %arg4[%c0_36, %c3] : memref<2x7xf32, #tpu.memory_space<smem>>
    %97 = vector.extract_strided_slice %27 {offsets = [0, 0], sizes = [1, 128], strides = [1, 1]} : vector<2x128xf32> to vector<1x128xf32>
    %98 = vector.broadcast %96 : f32 to vector<1x128xf32>
    %99 = arith.mulf %98, %97 : vector<1x128xf32>
    %c1_37 = arith.constant 1 : index
    %c3_38 = arith.constant 3 : index
    %100 = memref.load %arg4[%c1_37, %c3_38] : memref<2x7xf32, #tpu.memory_space<smem>>
    %101 = vector.extract_strided_slice %27 {offsets = [1, 0], sizes = [1, 128], strides = [1, 1]} : vector<2x128xf32> to vector<1x128xf32>
    %102 = vector.broadcast %100 : f32 to vector<1x128xf32>
    %103 = arith.mulf %102, %101 : vector<1x128xf32>
    %104 = arith.addf %99, %103 : vector<1x128xf32>
    %105 = arith.addf %95, %104 : vector<1x128xf32>
    %c127_i32 = arith.constant 127 : i32
    %106 = tpu.dynamic_rotate %27 by %c127_i32 dim 1 : vector<2x128xf32>, i32 -> vector<2x128xf32>
    %c0_39 = arith.constant 0 : index
    %c4 = arith.constant 4 : index
    %107 = memref.load %arg4[%c0_39, %c4] : memref<2x7xf32, #tpu.memory_space<smem>>
    %108 = vector.extract_strided_slice %106 {offsets = [0, 0], sizes = [1, 128], strides = [1, 1]} : vector<2x128xf32> to vector<1x128xf32>
    %109 = vector.broadcast %107 : f32 to vector<1x128xf32>
    %110 = arith.mulf %109, %108 : vector<1x128xf32>
    %c1_40 = arith.constant 1 : index
    %c4_41 = arith.constant 4 : index
    %111 = memref.load %arg4[%c1_40, %c4_41] : memref<2x7xf32, #tpu.memory_space<smem>>
    %112 = vector.extract_strided_slice %106 {offsets = [1, 0], sizes = [1, 128], strides = [1, 1]} : vector<2x128xf32> to vector<1x128xf32>
    %113 = vector.broadcast %111 : f32 to vector<1x128xf32>
    %114 = arith.mulf %113, %112 : vector<1x128xf32>
    %115 = arith.addf %110, %114 : vector<1x128xf32>
    %c1_i32_42 = arith.constant 1 : i32
    %116 = vector.broadcast %c1_i32_42 : i32 to vector<1x128xi32>
    %117 = arith.addi %28, %116 : vector<1x128xi32>
    %c0_i32_43 = arith.constant 0 : i32
    %118 = vector.broadcast %c0_i32_43 : i32 to vector<1x128xi32>
    %119 = arith.cmpi sge, %117, %118 : vector<1x128xi32>
    %c1_i32_44 = arith.constant 1 : i32
    %120 = vector.broadcast %c1_i32_44 : i32 to vector<1x128xi32>
    %121 = arith.addi %28, %120 : vector<1x128xi32>
    %c128_i32_45 = arith.constant 128 : i32
    %122 = vector.broadcast %c128_i32_45 : i32 to vector<1x128xi32>
    %123 = arith.cmpi slt, %121, %122 : vector<1x128xi32>
    %124 = arith.andi %119, %123 : vector<1x128xi1>
    %cst_46 = arith.constant 0.000000e+00 : f32
    %125 = vector.broadcast %cst_46 : f32 to vector<1x128xf32>
    %126 = arith.select %124, %115, %125 : vector<1x128xi1>, vector<1x128xf32>
    %127 = arith.addf %105, %126 : vector<1x128xf32>
    %c126_i32 = arith.constant 126 : i32
    %128 = tpu.dynamic_rotate %27 by %c126_i32 dim 1 : vector<2x128xf32>, i32 -> vector<2x128xf32>
    %c0_47 = arith.constant 0 : index
    %c5 = arith.constant 5 : index
    %129 = memref.load %arg4[%c0_47, %c5] : memref<2x7xf32, #tpu.memory_space<smem>>
    %130 = vector.extract_strided_slice %128 {offsets = [0, 0], sizes = [1, 128], strides = [1, 1]} : vector<2x128xf32> to vector<1x128xf32>
    %131 = vector.broadcast %129 : f32 to vector<1x128xf32>
    %132 = arith.mulf %131, %130 : vector<1x128xf32>
    %c1_48 = arith.constant 1 : index
    %c5_49 = arith.constant 5 : index
    %133 = memref.load %arg4[%c1_48, %c5_49] : memref<2x7xf32, #tpu.memory_space<smem>>
    %134 = vector.extract_strided_slice %128 {offsets = [1, 0], sizes = [1, 128], strides = [1, 1]} : vector<2x128xf32> to vector<1x128xf32>
    %135 = vector.broadcast %133 : f32 to vector<1x128xf32>
    %136 = arith.mulf %135, %134 : vector<1x128xf32>
    %137 = arith.addf %132, %136 : vector<1x128xf32>
    %c2_i32_50 = arith.constant 2 : i32
    %138 = vector.broadcast %c2_i32_50 : i32 to vector<1x128xi32>
    %139 = arith.addi %28, %138 : vector<1x128xi32>
    %c0_i32_51 = arith.constant 0 : i32
    %140 = vector.broadcast %c0_i32_51 : i32 to vector<1x128xi32>
    %141 = arith.cmpi sge, %139, %140 : vector<1x128xi32>
    %c2_i32_52 = arith.constant 2 : i32
    %142 = vector.broadcast %c2_i32_52 : i32 to vector<1x128xi32>
    %143 = arith.addi %28, %142 : vector<1x128xi32>
    %c128_i32_53 = arith.constant 128 : i32
    %144 = vector.broadcast %c128_i32_53 : i32 to vector<1x128xi32>
    %145 = arith.cmpi slt, %143, %144 : vector<1x128xi32>
    %146 = arith.andi %141, %145 : vector<1x128xi1>
    %cst_54 = arith.constant 0.000000e+00 : f32
    %147 = vector.broadcast %cst_54 : f32 to vector<1x128xf32>
    %148 = arith.select %146, %137, %147 : vector<1x128xi1>, vector<1x128xf32>
    %149 = arith.addf %127, %148 : vector<1x128xf32>
    %c125_i32 = arith.constant 125 : i32
    %150 = tpu.dynamic_rotate %27 by %c125_i32 dim 1 : vector<2x128xf32>, i32 -> vector<2x128xf32>
    %c0_55 = arith.constant 0 : index
    %c6 = arith.constant 6 : index
    %151 = memref.load %arg4[%c0_55, %c6] : memref<2x7xf32, #tpu.memory_space<smem>>
    %152 = vector.extract_strided_slice %150 {offsets = [0, 0], sizes = [1, 128], strides = [1, 1]} : vector<2x128xf32> to vector<1x128xf32>
    %153 = vector.broadcast %151 : f32 to vector<1x128xf32>
    %154 = arith.mulf %153, %152 : vector<1x128xf32>
    %c1_56 = arith.constant 1 : index
    %c6_57 = arith.constant 6 : index
    %155 = memref.load %arg4[%c1_56, %c6_57] : memref<2x7xf32, #tpu.memory_space<smem>>
    %156 = vector.extract_strided_slice %150 {offsets = [1, 0], sizes = [1, 128], strides = [1, 1]} : vector<2x128xf32> to vector<1x128xf32>
    %157 = vector.broadcast %155 : f32 to vector<1x128xf32>
    %158 = arith.mulf %157, %156 : vector<1x128xf32>
    %159 = arith.addf %154, %158 : vector<1x128xf32>
    %c3_i32_58 = arith.constant 3 : i32
    %160 = vector.broadcast %c3_i32_58 : i32 to vector<1x128xi32>
    %161 = arith.addi %28, %160 : vector<1x128xi32>
    %c0_i32_59 = arith.constant 0 : i32
    %162 = vector.broadcast %c0_i32_59 : i32 to vector<1x128xi32>
    %163 = arith.cmpi sge, %161, %162 : vector<1x128xi32>
    %c3_i32_60 = arith.constant 3 : i32
    %164 = vector.broadcast %c3_i32_60 : i32 to vector<1x128xi32>
    %165 = arith.addi %28, %164 : vector<1x128xi32>
    %c128_i32_61 = arith.constant 128 : i32
    %166 = vector.broadcast %c128_i32_61 : i32 to vector<1x128xi32>
    %167 = arith.cmpi slt, %165, %166 : vector<1x128xi32>
    %168 = arith.andi %163, %167 : vector<1x128xi1>
    %cst_62 = arith.constant 0.000000e+00 : f32
    %169 = vector.broadcast %cst_62 : f32 to vector<1x128xf32>
    %170 = arith.select %168, %159, %169 : vector<1x128xi1>, vector<1x128xf32>
    %171 = arith.addf %149, %170 : vector<1x128xf32>
    %172 = arith.negf %171 : vector<1x128xf32>
    %173 = math.exp %172 : vector<1x128xf32>
    %cst_63 = arith.constant 1.000000e+00 : f32
    %174 = vector.broadcast %cst_63 : f32 to vector<1x128xf32>
    %175 = arith.addf %174, %173 : vector<1x128xf32>
    %176 = arith.divf %174, %175 : vector<1x128xf32>
    %177 = vector.shape_cast %176 : vector<1x128xf32> to vector<1x1x128xf32>
    %178 = vector.broadcast %177 : vector<1x1x128xf32> to vector<1x32x128xf32>
    %179 = arith.mulf %22, %178 : vector<1x32x128xf32>
    %c0_64 = arith.constant 0 : index
    %c0_65 = arith.constant 0 : index
    %c0_66 = arith.constant 0 : index
    %180 = vector.load %arg5[%c0_64, %c0_65, %c0_66] : memref<1x32x128xf32, #tpu.memory_space<vmem>>, vector<1x32x128xf32>
    tpu.vector_store %arg5[%c0_64, %c0_65, %c0_66], %179 {strides = array<i32>} : memref<1x32x128xf32, #tpu.memory_space<vmem>>, vector<1x32x128xf32>,
    return
  }
  func.func @transform_0(%arg0: i32) -> (i32, i32, i32) {
    %c0_i32 = arith.constant 0 : i32
    %c0_i32_0 = arith.constant 0 : i32
    %c0_i32_1 = arith.constant 0 : i32
    return %arg0, %c0_i32, %c0_i32_0 : i32, i32, i32
  }
  func.func @transform_1(%arg0: i32) -> (i32, i32) {
    %c0_i32 = arith.constant 0 : i32
    %c0_i32_0 = arith.constant 0 : i32
    %c0_i32_1 = arith.constant 0 : i32
    return %c0_i32, %c0_i32_0 : i32, i32
  }
  func.func @transform_2(%arg0: i32) -> (i32, i32) {
    %c0_i32 = arith.constant 0 : i32
    %c0_i32_0 = arith.constant 0 : i32
    %c0_i32_1 = arith.constant 0 : i32
    return %c0_i32, %c0_i32_0 : i32, i32
  }
  func.func @transform_3(%arg0: i32) -> (i32, i32) {
    %c0_i32 = arith.constant 0 : i32
    %c0_i32_0 = arith.constant 0 : i32
    %c0_i32_1 = arith.constant 0 : i32
    return %c0_i32, %c0_i32_0 : i32, i32
  }
  func.func @transform_4(%arg0: i32) -> (i32, i32, i32) {
    %c0_i32 = arith.constant 0 : i32
    %c0_i32_0 = arith.constant 0 : i32
    %c0_i32_1 = arith.constant 0 : i32
    return %arg0, %c0_i32, %c0_i32_0 : i32, i32, i32
  }
}

</mosaic_0001>

<bundles_post_ra>
// kernel: tpu_custom_call.1
= control target key start
LH: loop header
LB: loop body
LE: loop exit
PB: predicated region body
PF: predicated region fallthrough
CT: control target
= control target key end

     0   :  { %s1190_s0 = inlined_call_operand.hbm [shape: f32[2,32,128], index: 0, kind: input, shape index: {}]   ;;  %s1191_s1 = inlined_call_operand.vmem [shape: f32[32,2], index: 1, kind: input, shape index: {}]   ;;  %s1192_s2 = inlined_call_operand.vmem [shape: f32[2,32], index: 2, kind: input, shape index: {}]   ;;  %s1193_s3 = inlined_call_operand.vmem [shape: f32[2,7], index: 3, kind: input, shape index: {}]   ;;  %s1194_s4 = inlined_call_operand.hbm [shape: f32[2,32,128], index: 4, kind: output, shape index: {}]  }
   0x1   :  { %1195 = sst [smem:[#allocation11_spill]] %s1193_s3 }
   0x2   :  { %9 = vsyncpa [#allocation3], 0 }
   0x3   :  { %11 = vsyncpa [#allocation3 + $0x1], 0 }
   0x4   :  { %12 = vsyncpa [#allocation5], 0 }
   0x5   :  { %13 = vsyncpa [#allocation4], 0 }
   0x6   :  { %15 = vsyncpa [#allocation4 + $0x1], 0  ;;  %s937_s15 = smov 0   ;;  %s939_s16 = smov 0  }
   0x7   :  { %s941_s17 = smov 0   ;;  %s943_s18 = smov 0  }
   0x8 LB: > { %s958_s19 = sadd.s32 4294967295, %s899_s18   ;;  %s668_s20 = sadd.s32 4294967294, %s899_s18   ;;  %s899_s18 = sphi %s943_s18, %s1207_s18   ;;  %s895_s17 = sphi %s941_s17, %s1206_s17   ;;  %s891_s16 = sphi %s939_s16, %s1205_s16   ;;  %s887_s15 = sphi %s937_s15, %s1204_s15  }
   0x9   : > { %s962_s21 = sadd.s32 1, %s899_s18   ;;  %s28_s22 = sadd.s32 1, %s895_s17 }
   0xa   : > { %s25_s23 = ssub.s32 %s899_s18, %s962_s21  ;;  %p35_p0 = scmp.ne.s32.totalorder %s895_s17, %s891_s16 }
   0xb   : > { %p26_p1 = scmp.eq.s32.totalorder %s25_s23, 0  ;;  %p36_p2 = scmp.eq.s32.totalorder %s899_s18, 0 }
   0xc   : > { %p41_p3 = scmp.ne.s32.totalorder %s891_s16, %s887_s15  ;;  %p42_p4 = scmp.eq.s32.totalorder %s958_s19, 0 }
   0xd   : > { %s974_s24 = scalar_select %p26_p1, %s895_s17, %s28_s22  }
   0xe   : > { %p976_p5 = por %p36_p2, %p35_p0  ;;  %p982_p6 = por %p42_p4, %p41_p3 }
   0xf   : > { %p128_p7 = scmp.eq.s32.totalorder %s958_s19, 1  ;;  %p134_p8 = scmp.eq.s32.totalorder %s668_s20, 1 }
  0x10   : > { %p669_p9 = scmp.ge.s32.totalorder %s899_s18, 1  ;;  %p141_p10 = scmp.lt.s32.totalorder %s899_s18, 3 }
  0x11   : > { %p989_p11 = por %p128_p7, %p35_p0  ;;  %p993_p12 = por %p134_p8, %p41_p3 }
  0x12   : > { %p997_p13 = pnand %p669_p9, %p141_p10  ;;  %s1201_s3 = sld [smem:[#allocation11_spill]] }
  0x13   : > { %p725_p2 = scmp.lt.s32.totalorder %s899_s18, 2  ;;  %s170_s7 = sand.u32 1, %s895_s17  }
  0x14   : > { %p712_p1 = pneg %p997_p13  ;;  %s672_s9 = sshll.u32 %s170_s7, 5 }
  0x15   : > { %p1013_p3 = pnand %p725_p2, %p976_p5  ;;  %s901_s10 = smov [#allocation6]  }
  0x16   : > { %p713_p7 = pnand %p712_p1, %p42_p4  ;;  %s702_s11 = sshll.u32 %s899_s18, 5 }
  0x17   : > { %s174_s12 = scalar_lea.vmem [#allocation2], %s672_s9  ;;  %s179_s22 = scalar_lea.hbm %s1190_s0, %s702_s11 }
  0x18   : > { %s159_s6 = sshll.u32 %s1201_s3, 4  ;;  %s182_s13 = sshll.u32 %s174_s12, 4  ;;  %s160_s6 = int_to_ptr.vmem [resolvable:$true] %s159_s6  ;;  %s183_s13 = int_to_ptr.vmem [resolvable:$true] %s182_s13 }
  0x19   : > { %715 = dma.vmem_to_smem (!%p713_p7), %s160_s6, 32, %s901_s10, [#allocation5]  }
  0x1a   : > { %s180_s23 = sshll.u32 %s179_s22, 4  ;;  %s171_s30 = scalar_lea.sflag [#allocation3], %s170_s7  ;;  %s181_s23 = int_to_ptr.hbm [resolvable:$true] %s180_s23 }
  0x1b   : > { %s799_s25 = sshra.s32 %s181_s23, 4  ;;  %p803_p8 = pneg %p1013_p3  ;;  %s800_s25 = int_to_ptr.hbm [resolvable:$true] %s799_s25 }
  0x1c   : > { %s801_s5 = scalar_lea.hbm %s800_s25, 32  ;;  %s806_s9 = scalar_lea.hbm %s1190_s0, 64 }
  0x1d   : > { %p802_p5 = scmp.ne.s32.totalorder %s800_s25, %s801_s5  ;;  %p807_p1 = scmp.lt.s32.totalorder %s800_s25, %s1190_s0 }
  0x1e   : > { %p808_p2 = scmp.lt.s32.totalorder %s806_s9, %s801_s5 }
  0x1f   : > { %p804_p9 = pnand %p803_p8, %p802_p5 }
  0x20   : > { %p809_p7 = por %p808_p2, %p807_p1 }
  0x21   : > { %p805_p10 = pneg %p804_p9 }
  0x23   : > { %p810_p0 = pnand %p809_p7, %p805_p10 }
  0x25   : > { %813 = shalt.err (!%p810_p0)
}
  0x26   : > { %s902_s7 = smov 128   ;;  %s903_s11 = smov 8  }
  0x27   : > { %719 = dma.hbm_to_vmem [thread:$0]  (!%p1013_p3), %s181_s23, 512, %s183_s13, %s171_s30, %s902_s7, %s902_s7, %s903_s11  }
  0x28   : > { %194 = sbr.rel (%p997_p13) target bundleno = 789 (0x315), region = 36  ;;  %s1034_s14 = sand.u32 (!%p997_p13), 1, %s891_s16  }
  0x29   : > { %s676_s3 = sshll.u32 (!%p997_p13), %s1034_s14, 5  ;;  %s197_s20 = scalar_lea.sflag (!%p997_p13), [#allocation3], %s1034_s14 }
  0x2a   : > { %s200_s22 = scalar_lea.vmem (!%p997_p13), [#allocation2], %s676_s3 }
  0x2d   : > { %874 = dma.done.wait (%p982_p6), %s197_s20, 512  }
  0x2e   : > { %876 = vsyncadd (%p982_p6), %s197_s20, 4294966784 }
  0x2f   : > { %878 = dma.done.wait (%p42_p4), [#allocation5], 32  }
  0x30   : > { %880 = vsyncadd (%p42_p4), [#allocation5], 4294967264 }
  0x31   : > { %211 = sfence }
  0x32   : > { %v1048_v0 = vld [vmem:[%s200_s22] sm:$0xff]  ;;  %v1050_v1 = vld [vmem:[%s200_s22 + $0x10] sm:$0xff]  ;;  %v1055_v2 = vld [vmem:[%s200_s22 + $0x8] sm:$0xff]  ;;  %v260_v11 = vlaneseq  ;;  %vm265_vm0 = vcmask 130112   ;;  %vm269_vm1 = vcmask 195712   ;;  %vm273_vm2 = vcmask 261312  }
  0x33   : > { %248 = vmax.xlane.f32.xlu2 %v1048_v0  ;;  %236 = vadd.xlane.f32.xlu0 %v1048_v0  ;;  %v1057_v3 = vld [vmem:[%s200_s22 + $0x18] sm:$0xff]  ;;  %v292_v5 = vld [vmem:[%s1191_s1 + $0x10] sm:$0xff]  ;;  %v291_v6 = vld [vmem:[%s1191_s1 + $0x8] sm:$0xff]  ;;  %vm288_vm3 = vcmask 1040384   ;;  %vm294_vm4 = vcmask 261120   ;;  %vm324_vm5 = vcmask 1041408  }
  0x34   : > { %240 = vadd.xlane.f32.xlu1 %v1050_v1  ;;  %v293_v4 = vld [vmem:[%s1191_s1 + $0x18] sm:$0xff]  ;;  %v290_v7 = vld [vmem:[%s1191_s1] sm:$0xff]  ;;  %v1076_v12 = vand.u32 127, %v260_v11  ;;  %vm320_vm6 = vcmask 15360   ;;  %v373_v43 = vshrl.u32 %v260_v11, 7  ;;  %s904_s9 = smov 126  }
  0x35   : > { %310 = vmatpush.msra.mxu0 %v293_v4  ;;  %v319_v40 = vld [vmem:[%s1192_s2] sm:$0x3]  ;;  %s905_s12 = smov 2   ;;  %s906_s7 = smov 3  }
  0x36   : > { %v263_v15 = vadd.s32 4294967288, %v1076_v12  ;;  %v267_v18 = vadd.s32 4294967280, %v1076_v12  ;;  %v271_v23 = vadd.s32 4294967272, %v1076_v12  ;;  %680 = vmatpush.msk.msra.mxu1 %vm324_vm5, %v319_v40  ;;  %771 = vset.pattern.permute.xlu2 %v373_v43  ;;  %v386_v44 = vadd.s32 16, %v373_v43  ;;  %s907_s11 = smov 127   ;;  %s908_s20 = smov 1  }
  0x37   : > { %311 = vmatpush.msra.mxu0 %v292_v5  ;;  %v380_v45 = vadd.s32 8, %v373_v43  ;;  %v392_v63 = vadd.s32 24, %v373_v43  ;;  %s909_s22 = smov 125   ;;  %s683_s26 = sld [smem:[#allocation6 + $0x80]] }
  0x38   : > { %773 = vset.pattern.permute.xlu1 %v386_v44  ;;  %s687_s29 = sld [smem:[#allocation6 + $0x82]] }
  0x39   : > { %312 = vmatpush.msra.mxu0 %v291_v6  ;;  %772 = vset.pattern.permute.xlu0 %v380_v45  ;;  %s1116_s8 = sld [smem:[#allocation6 + $0x83]] }
  0x3a   : > { %s422_s13 = sld [smem:[#allocation6]] }
  0x3b   : > { %250 = vmax.xlane.f32.xlu2 %v1055_v2  ;;  %238 = vadd.xlane.f32.xlu0 %v1055_v2  ;;  %s685_s23 = sld [smem:[#allocation6 + $0x81]] }
  0x3c   : > { %242 = vadd.xlane.f32.xlu1 %v1057_v3  ;;  %313 = vmatpush.msra.mxu0 %v290_v7  ;;  %s1118_s30 = sld [smem:[#allocation6 + $0x2]] }
  0x3d   : > { %s684_s25 = sld [smem:[#allocation6 + $0x1]] }
  0x3e   : > { %s1120_s5 = sld [smem:[#allocation6 + $0x85]] }
  0x3f   : > { %s1122_s6 = sld [smem:[#allocation6 + $0x86]] }
  0x40   : > { %s1124_s10 = sld [smem:[#allocation6 + $0x3]] }
  0x42   : > { %v459_v40 = vstv %s1118_s30 }
  0x43   : > { %252 = vmax.xlane.f32.xlu0 %v1050_v1 }
  0x44   : > { %254 = vmax.xlane.f32.xlu1 %v1057_v3 }
  0xa6   : > { %v237_v8 = vpop.xlane.xlu0 %236  ;;  %v249_v9 = vpop.xlane.xlu2 %248 }
  0xa7   : > { %v241_v10 = vpop.xlane.xlu1 %240  ;;  %v244_v13 = vmul.f32 0.0078125, %v237_v8  ;;  %v280_v25 = vperm.slane %v249_v9, %v1076_v12 }
  0xa8   : > { %v246_v19 = vmul.f32 0.0078125, %v241_v10 }
  0xa9   : > { %v262_v22 = vperm.slane %v244_v13, %v1076_v12 }
  0xaa   : > { %v268_v28 = vperm.slane %v246_v19, %v267_v18 }
  0xae   : > { %v239_v14 = vpop.xlane.xlu0 %238  ;;  %v251_v20 = vpop.xlane.xlu2 %250 }
  0xaf   : > { %v245_v16 = vmul.f32 0.0078125, %v239_v14  ;;  %v243_v17 = vpop.xlane.xlu1 %242  ;;  %v281_v26 = vperm.slane %v251_v20, %v263_v15 }
  0xb0   : > { %v247_v24 = vmul.f32 0.0078125, %v243_v17 }
  0xb1   : > { %v264_v21 = vperm.slane %v245_v16, %v263_v15  ;;  %v282_v34 = vsel %vm265_vm0, %v281_v26, %v280_v25 }
  0xb2   : > { %v272_v29 = vperm.slane %v247_v24, %v271_v23 }
  0xb3   : > { %v266_v27 = vsel %vm265_vm0, %v264_v21, %v262_v22 }
  0xb4   : > { %v270_v33 = vsel %vm269_vm1, %v268_v28, %v266_v27 }
  0xb5   : > { %v274_v37 = vsel %vm273_vm2, %v272_v29, %v270_v33 }
  0xb6   : > { %v253_v30 = vpop.xlane.xlu0 %252 }
  0xb7   : > { %v283_v31 = vperm.slane %v253_v30, %v267_v18  ;;  %v255_v32 = vpop.xlane.xlu1 %254  ;;  %v426_v30 = vstv %s683_s26 }
  0xb8   : > { %v285_v35 = vperm.slane %v255_v32, %v271_v23 }
  0xb9   : > { %v284_v36 = vsel %vm269_vm1, %v283_v31, %v282_v34  ;;  %v462_v31 = vstv %s687_s29 }
  0xba   : > { %v286_v38 = vsel %vm273_vm2, %v285_v35, %v284_v36  ;;  %v423_v35 = vstv %s422_s13  ;;  %v444_v36 = vstv %s685_s23 }
  0xbb   : > { %v289_v39 = vsel %vm288_vm3, %v274_v37, %v286_v38  ;;  %v478_v38 = vstv %s1116_s8  ;;  %s231_s8 = scalar_lea.vmem [#allocation7], %s676_s3 }
  0xbc   : > { %679 = vmatmul.msk.f32.vlgmr.msra.gmra.mxu0 %vm294_vm4, %v289_v39  ;;  %v432_v39 = vadd.s32 4294967293, %v1076_v12  ;;  %s580_s13 = sshll.u32 %s231_s8, 4  ;;  %s581_s13 = int_to_ptr.vmem [resolvable:$true] %s580_s13 }
  0xbe   : > { %vm433_vm11 = vcmp.ge.s32.totalorder %v432_v39, 0 }
 0x139   : > { %v315_v41 = vpop.f32.mrf.mxu0 }
 0x13a   : > { %v318_v42 = vmax.f32 %v315_v41, 0.0  ;;  %v441_v41 = vstv %s684_s25 }
 0x13c   : > { %681 = vmatmul.msk.f32.vlgmr.msra.gmra.mxu1 %vm320_vm6, %v318_v42  ;;  %v450_v42 = vadd.s32 4294967294, %v1076_v12 }
 0x13e   : > { %vm451_vm12 = vcmp.ge.s32.totalorder %v450_v42, 0 }
 0x1b9   : > { %v345_v46 = vpop.f32.mrf.mxu1 }
 0x1ba   : > { %v349_v47 = vrot.slane %v345_v46, 1 }
 0x1bc   : > { %v351_v48 = vadd.f32 %v349_v47, %v345_v46  ;;  %v468_v47 = vadd.s32 4294967295, %v1076_v12 }
 0x1be   : > { %v682_v49 = vmul.f32 -1.442695, %v351_v48  ;;  %v509_v48 = vstv %s1120_s5  ;;  %vm469_vm13 = vcmp.ge.s32.totalorder %v468_v47, 0 }
 0x1c0   : > { %776 = vpow2.f32 %v682_v49 }
 0x1c6   : > { %v777_v50 = vpop.eup %776 }
 0x1c7   : > { %v355_v51 = vadd.f32 1.0, %v777_v50 }
 0x1c9   : > { %778 = vrcp.f32 %v355_v51  ;;  %v367_v55 = vand.u32 2147483648, %v355_v51  ;;  %v365_v57 = vand.u32 2147483647, %v355_v51  ;;  %vm361_vm8 = vweird.f32 %v355_v51 }
 0x1cb   : > { %v368_v59 = vor.u32 1.1754944e-38, %v367_v55  ;;  %vm366_vm10 = vcmp.eq.f32.partialorder %v365_v57, 8.507059e+37  ;;  %v527_v55 = vstv %s1122_s6  ;;  %s849_s6 = scalar_lea.hbm %s1194_s4, 64 }
 0x1cf   : > { %v779_v52 = vpop.eup %778 }
 0x1d0   : > { %v357_v53 = vmul.f32 %v779_v52, %v355_v51  ;;  %vm362_vm7 = vweird.f32 %v779_v52 }
 0x1d1   : > { %vm363_vm9 = vmor %vm361_vm8, %vm362_vm7 }
 0x1d2   : > { %v358_v54 = vsub.f32 1.0, %v357_v53 }
 0x1d4   : > { %v359_v56 = vmul.f32 %v779_v52, %v358_v54 }
 0x1d6   : > { %v360_v58 = vadd.f32 %v779_v52, %v359_v56 }
 0x1d8   : > { %v364_v60 = vsel %vm363_vm9, %v779_v52, %v360_v58 }
 0x1d9   : > { %v369_v61 = vsel %vm366_vm10, %v368_v59, %v364_v60  ;;  %v475_v60 = vstv %s1124_s10 }
 0x1da   : > { %v371_v62 = vperm.slane %v369_v61, 0 }
 0x1dc   : > { %388 = vperm.xlu1 %773, %v371_v62   ;;  %382 = vperm.xlu0 %772, %v371_v62  }
 0x1dd   : > { %376 = vperm.xlu2 %771, %v371_v62  }
 0x1e4   : > { %775 = vset.pattern.permute.xlu0 %v392_v63 }
 0x1e5   : > { %774 = vset.pattern.permute.xlu2 %v392_v63 }
 0x1ed   : > { %394 = vperm.xlu2 %774, %v371_v62  }
 0x237   : > { %v377_v4 = vpop.permute.xlu2 %376 }
 0x238   : > { %v1088_v8 = vmul.f32 %v377_v4, %v1048_v0 }
 0x247   : > { %v395_v5 = vpop.permute.xlu2 %394 }
 0x248   : > { %v1091_v9 = vmul.f32 %v395_v5, %v1057_v3 }
 0x24e   : > { %v389_v6 = vpop.permute.xlu1 %388  ;;  %v383_v7 = vpop.permute.xlu0 %382 }
 0x24f   : > { %v1094_v10 = vmul.f32 %v389_v6, %v1050_v1  ;;  %v1097_v11 = vmul.f32 %v383_v7, %v1055_v2 }
 0x251   : > { %v411_v13 = vmax.f32 %v1094_v10, %v1091_v9  ;;  %v400_v14 = vadd.f32 %v1097_v11, %v1088_v8  ;;  %v410_v15 = vmax.f32 %v1088_v8, %v1097_v11 }
 0x253   : > { %v401_v0 = vadd.f32 %v400_v14, %v1094_v10  ;;  %v412_v16 = vmax.f32 %v410_v15, %v411_v13  ;;  %v497_v14 = vadd.s32 1, %v1076_v12 }
 0x255   : > { %v402_v3 = vadd.f32 %v401_v0, %v1091_v9  ;;  %v413_v17 = vrot.slane %v412_v16, 4  ;;  %vm499_vm14 = vcmp.lt.s32.totalorder %v497_v14, 128 }
 0x257   : > { %v403_v1 = vrot.slane %v402_v3, 4  ;;  %v414_v18 = vmax.f32 %v412_v16, %v413_v17 }
 0x259   : > { %v404_v19 = vadd.f32 %v403_v1, %v402_v3  ;;  %v415_v2 = vrot.slane %v414_v18, 2  ;;  %v515_v1 = vadd.s32 2, %v1076_v12 }
 0x25b   : > { %v405_v20 = vrot.slane %v404_v19, 2  ;;  %v416_v21 = vmax.f32 %v414_v18, %v415_v2  ;;  %vm517_vm15 = vcmp.lt.s32.totalorder %v515_v1, 128 }
 0x25d   : > { %v406_v22 = vadd.f32 %v405_v20, %v404_v19  ;;  %v417_v24 = vrot.slane %v416_v21, 1 }
 0x25f   : > { %v407_v23 = vrot.slane %v406_v22, 1  ;;  %v418_v27 = vmax.f32 %v416_v21, %v417_v24 }
 0x261   : > { %v408_v25 = vadd.f32 %v407_v23, %v406_v22  ;;  %v533_v23 = vadd.s32 3, %v1076_v12 }
 0x263   : > { %v409_v26 = vmul.f32 0.03125, %v408_v25  ;;  %vm535_vm0 = vcmp.lt.s32.totalorder %v533_v23, 128 }
 0x265   : > { %v1108_v28 = vsel %vm288_vm3, %v409_v26, %v418_v27 }
 0x266   : > { %503 = vrot.lane.b32.xlu0 %v1108_v28, %s904_s9  ;;  %438 = vrot.lane.b32.xlu1 %v1108_v28, %s905_s12  ;;  %s1126_s9 = sld [smem:[#allocation6 + $0x84]]  ;;  %v479_v50 = vmul.f32 %v478_v38, %v1108_v28  ;;  %v476_v19 = vmul.f32 %v475_v60, %v1108_v28 }
 0x267   : > { %420 = vrot.lane.b32.xlu2 %v1108_v28, %s906_s7  ;;  %s1128_s12 = sld [smem:[#allocation6 + $0x5]] }
 0x268   : > { %s1134_s7 = sld [smem:[#allocation6 + $0x4]]  ;;  %v481_v5 = vrot.slane %v479_v50, 1 }
 0x26a   : > { %v483_v24 = vadd.f32 %v481_v5, %v476_v19 }
 0x26c   : > { %v491_v61 = vstv %s1126_s9 }
 0x26d   : > { %v506_v6 = vstv %s1128_s12 }
 0x26e   : > { %485 = vrot.lane.b32.xlu1 %v1108_v28, %s907_s11  ;;  %s1137_s11 = sld [smem:[#allocation6 + $0x6]]  ;;  %v488_v13 = vstv %s1134_s7 }
 0x26f   : > { %456 = vrot.lane.b32.xlu2 %v1108_v28, %s908_s20  ;;  %s703_s20 = sshll.u32 %s958_s19, 5  ;;  %s568_s19 = scalar_lea.sflag [#allocation4], %s1034_s14 }
 0x270   : > { %s579_s29 = scalar_lea.hbm %s1194_s4, %s703_s20 }
 0x271   : > { %s582_s23 = sshll.u32 %s579_s29, 4  ;;  %s583_s23 = int_to_ptr.hbm [resolvable:$true] %s582_s23 }
 0x272   : > { %s843_s30 = sshra.s32 %s583_s23, 4  ;;  %s844_s30 = int_to_ptr.hbm [resolvable:$true] %s843_s30 }
 0x273   : > { %s845_s3 = scalar_lea.hbm %s844_s30, 32  ;;  %p850_p0 = scmp.lt.s32.totalorder %s844_s30, %s1194_s4 }
 0x274   : > { %v524_v17 = vstv %s1137_s11  ;;  %p846_p4 = scmp.ne.s32.totalorder %s844_s30, %s845_s3  ;;  %p851_p3 = scmp.lt.s32.totalorder %s849_s6, %s845_s3 }
 0x276   : > { %p847_p6 = pnand %p846_p4, %p989_p11  ;;  %p852_p5 = por %p851_p3, %p850_p0 }
 0x277   : > { %521 = vrot.lane.b32.xlu2 %v1108_v28, %s909_s22 }
 0x278   : > { %p848_p13 = pneg %p847_p6 }
 0x27a   : > { %p853_p8 = pnand %p852_p5, %p848_p13 }
 0x2c1   : > { %v421_v29 = vpop.permute.xlu2 %420 }
 0x2c2   : > { %v427_v33 = vmul.f32 %v426_v30, %v421_v29  ;;  %v424_v44 = vmul.f32 %v423_v35, %v421_v29 }
 0x2c4   : > { %v429_v37 = vrot.slane %v427_v33, 1 }
 0x2c6   : > { %v431_v51 = vadd.f32 %v429_v37, %v424_v44 }
 0x2c8   : > { %v436_v62 = vsel %vm433_vm11, %v431_v51, 0.0 }
 0x2c9   : > { %v457_v32 = vpop.permute.xlu2 %456 }
 0x2ca   : > { %v463_v34 = vmul.f32 %v462_v31, %v457_v32  ;;  %v460_v52 = vmul.f32 %v459_v40, %v457_v32 }
 0x2cc   : > { %v465_v45 = vrot.slane %v463_v34, 1 }
 0x2ce   : > { %v467_v57 = vadd.f32 %v465_v45, %v460_v52 }
 0x2d0   : > { %v472_v0 = vsel %vm469_vm13, %v467_v57, 0.0 }
 0x2d1   : > { %v522_v56 = vpop.permute.xlu2 %521 }
 0x2d2   : > { %v528_v63 = vmul.f32 %v527_v55, %v522_v56  ;;  %v525_v25 = vmul.f32 %v524_v17, %v522_v56 }
 0x2d4   : > { %v530_v2 = vrot.slane %v528_v63, 1 }
 0x2d6   : > { %v532_v30 = vadd.f32 %v530_v2, %v525_v25 }
 0x2d8   : > { %v439_v43 = vpop.permute.xlu1 %438  ;;  %v504_v49 = vpop.permute.xlu0 %503  ;;  %v537_v34 = vsel %vm535_vm0, %v532_v30, 0.0 }
 0x2d9   : > { %v445_v46 = vmul.f32 %v444_v36, %v439_v43  ;;  %v442_v53 = vmul.f32 %v441_v41, %v439_v43  ;;  %v510_v58 = vmul.f32 %v509_v48, %v504_v49  ;;  %v507_v20 = vmul.f32 %v506_v6, %v504_v49 }
 0x2db   : > { %v447_v54 = vrot.slane %v445_v46, 1  ;;  %v512_v16 = vrot.slane %v510_v58, 1 }
 0x2dd   : > { %v449_v59 = vadd.f32 %v447_v54, %v442_v53  ;;  %v514_v26 = vadd.f32 %v512_v16, %v507_v20 }
 0x2df   : > { %v454_v4 = vsel %vm451_vm12, %v449_v59, 0.0  ;;  %v519_v33 = vsel %vm517_vm15, %v514_v26, 0.0 }
 0x2e0   : > { %v455_v7 = vadd.f32 %v454_v4, %v436_v62  ;;  %v486_v15 = vpop.permute.xlu1 %485 }
 0x2e1   : > { %v492_v3 = vmul.f32 %v491_v61, %v486_v15  ;;  %v489_v21 = vmul.f32 %v488_v13, %v486_v15 }
 0x2e2   : > { %v473_v18 = vadd.f32 %v472_v0, %v455_v7 }
 0x2e3   : > { %v494_v22 = vrot.slane %v492_v3, 1 }
 0x2e4   : > { %v484_v29 = vadd.f32 %v483_v24, %v473_v18 }
 0x2e5   : > { %v496_v27 = vadd.f32 %v494_v22, %v489_v21 }
 0x2e7   : > { %v501_v31 = vsel %vm499_vm14, %v496_v27, 0.0 }
 0x2e8   : > { %v502_v32 = vadd.f32 %v501_v31, %v484_v29 }
 0x2ea   : > { %v520_v28 = vadd.f32 %v519_v33, %v502_v32 }
 0x2ec   : > { %v538_v35 = vadd.f32 %v537_v34, %v520_v28 }
 0x2ee   : > { %v696_v36 = vmul.f32 -1.442695, %v538_v35 }
 0x2f0   : > { %780 = vpow2.f32 %v696_v36 }
 0x2f6   : > { %v781_v37 = vpop.eup %780 }
 0x2f7   : > { %v542_v12 = vadd.f32 1.0, %v781_v37 }
 0x2f9   : > { %782 = vrcp.f32 %v542_v12  ;;  %v554_v41 = vand.u32 2147483648, %v542_v12  ;;  %v552_v43 = vand.u32 2147483647, %v542_v12  ;;  %vm548_vm2 = vweird.f32 %v542_v12 }
 0x2fb   : > { %v555_v45 = vor.u32 1.1754944e-38, %v554_v41  ;;  %vm553_vm4 = vcmp.eq.f32.partialorder %v552_v43, 8.507059e+37 }
 0x2ff   : > { %v783_v38 = vpop.eup %782 }
 0x300   : > { %v544_v39 = vmul.f32 %v783_v38, %v542_v12  ;;  %vm549_vm1 = vweird.f32 %v783_v38 }
 0x301   : > { %vm550_vm3 = vmor %vm548_vm2, %vm549_vm1 }
 0x302   : > { %v545_v40 = vsub.f32 1.0, %v544_v39 }
 0x304   : > { %v546_v42 = vmul.f32 %v783_v38, %v545_v40 }
 0x306   : > { %v547_v44 = vadd.f32 %v783_v38, %v546_v42 }
 0x308   : > { %v551_v46 = vsel %vm550_vm3, %v783_v38, %v547_v44 }
 0x309   : > { %v556_v47 = vsel %vm553_vm4, %v555_v45, %v551_v46 }
 0x30a   : > { %v558_v48 = vperm.slane %v556_v47, 0 }
 0x30c   : > { %v559_v49 = vmul.f32 %v558_v48, %v1088_v8  ;;  %v560_v50 = vmul.f32 %v558_v48, %v1097_v11  ;;  %v561_v51 = vmul.f32 %v558_v48, %v1094_v10  ;;  %v562_v52 = vmul.f32 %v558_v48, %v1091_v9 }
 0x30e   : > { %563 = vst [vmem:[%s231_s8] sm:$0xff] %v559_v49 }
 0x30f   : > { %564 = vst [vmem:[%s231_s8 + $0x8] sm:$0xff] %v560_v50 }
 0x310   : > { %565 = vst [vmem:[%s231_s8 + $0x10] sm:$0xff] %v561_v51 }
 0x311   : > { %566 = vst [vmem:[%s231_s8 + $0x18] sm:$0xff] %v562_v52 }
 0x312   : > { %856 = shalt.err (!%p853_p8)
}
 0x313   : > { %s910_s14 = smov 128   ;;  %s911_s12 = smov 8  }
 0x314   : > { %710 = dma.vmem_to_hbm [thread:$0]  (%p989_p11), %s581_s13, 512, %s583_s23, %s568_s19, %s910_s14, %s910_s14, %s911_s12  }
 0x315 PF: > { %s597_s7 = sand.u32 1, %s887_s15   ;;  %p1203_p9 = scmp.ge.s32.totalorder %s899_s18, 2 }
 0x316   : > { %s598_s11 = scalar_lea.sflag [#allocation4], %s597_s7 }
 0x317   : > { %p721_p10 = pnand %p1203_p9, %p993_p12 }
 0x319   : > { %p722_p1 = pneg %p721_p10 }
 0x31b   : > { %882 = dma.done.wait (%p722_p1), %s598_s11, 512  }
 0x31c   : > { %884 = vsyncadd (%p722_p1), %s598_s11, 4294966784  ;;  %p18_p2 = scmp.ge.s32.totalorder %s962_s21, 4   ;;  %s1204_s15 = smov %s891_s16 }
 0x31d   : > { %s1205_s16 = smov %s895_s17  ;;  %s1206_s17 = smov %s974_s24 }
 0x31e   : > { %s1207_s18 = smov %s962_s21  ;;  %20 = sbr.rel (!%p18_p2) target bundleno = 8 (0x8), region = 86 }
 0x323   :  { %604 = vsyncpa [#allocation3], 1 }
 0x324   :  { %606 = vsyncpa [#allocation3 + $0x1], 1 }
 0x325   :  { %607 = vsyncpa [#allocation4], 1 }
 0x326   :  { %609 = vsyncpa [#allocation4 + $0x1], 1 }
 0x327   :  { %610 = vsyncpa [#allocation5], 1 }
 0x328   :  { %612 = vsyncpa [#allocation5 + $0x1], 1 }

</bundles_post_ra>
